<compile_context>
chip_gen: v5e
topology: v5e:2x2
jax: 0.10.0
libtpu: 0.0.40
codegen_flags: <defaults>
</compile_context>

<pallas_src>
import functools

import jax
import jax.numpy as jnp
from jax.experimental import pallas as pl
from jax.experimental.pallas import tpu as pltpu

HIDDEN = 128          # FCBlock hidden width
N_HIDDEN_LAYERS = 3   # FCBlock num_hidden_layers
LATENT_DIM = 128      # NeuroPredicate latent_dim default
LANE = 128            # TPU lane width
SUBLANE = 8           # TPU sublane width
MAX_TB = 4096         # max batch tile; (4096,128) slabs stay well inside 32-48 MiB VMEM


def _round_up(x, m):
    return (x + m - 1) // m * m


def _act_dtype():
    # v5e VPU/EUP have no bf16 path -> keep f32 activations there; bf16 elsewhere.
    try:
        kind = jax.devices()[0].device_kind.lower()
    except Exception:  # pragma: no cover - defensive
        kind = ""
    return jnp.float32 if "v5" in kind else jnp.bfloat16


ACT_DTYPE = _act_dtype()


def mlp_kernel(x_ref,
               w0_ref, b0_ref,
               w1_ref, b1_ref,
               w2_ref, b2_ref,
               w3_ref, b3_ref,
               w4_ref, b4_ref,
               o_ref, *, act_dtype):
    """Whole 5-layer MLP for one batch tile; all weights resident in VMEM.

    Matmul operands bf16 (MXU-native), accumulation f32; sigmoid uses the
    tanh form (single EUP op) in `act_dtype` (bf16 on v6e/v7x, f32 on v5e).
    """
    layers = ((w0_ref, b0_ref), (w1_ref, b1_ref), (w2_ref, b2_ref),
              (w3_ref, b3_ref), (w4_ref, b4_ref))
    h = x_ref[...].astype(jnp.bfloat16)          # cast-after-load (VPU, hidden under MXU/EUP)
    for w_ref, b_ref in layers:
        z = jnp.dot(h, w_ref[...], preferred_element_type=jnp.float32) + b_ref[...]
        a = jnp.tanh(z.astype(act_dtype) * 0.5) * 0.5 + 0.5   # sigmoid(z), 1 EUP op
        h = a.astype(jnp.bfloat16)               # no-op when act_dtype is bf16
    o_ref[...] = h.astype(o_ref.dtype)           # bf16 lane-dense store


@functools.partial(jax.jit, static_argnames=("out_features",))
def neuro_predicate_forward(x, params, out_features):
    """x: (B, latent_dim) f32.  params: list of (W, b) with W:(in,out), b:(1,out)."""
    B, D = x.shape

    # Balanced batch tiles: minimize padding, cap tile at MAX_TB rows, and keep
    # >=2 grid steps whenever B allows so both v7x TensorCores get work.
    num_tiles = max(1, pl.cdiv(B, MAX_TB))
    if num_tiles == 1 and B >= 2 * SUBLANE:
        num_tiles = 2
    tb = _round_up(pl.cdiv(B, num_tiles), SUBLANE)
    Bp = tb * num_tiles
    # Lane-dense output width (pads the boolean head's N=1 to 128).
    Np = _round_up(out_features, LANE)

    # x stays f32 (kernel casts after load -> no materialized bf16 copy in HBM).
    x_p = x if Bp == B else jnp.pad(x, ((0, Bp - B), (0, 0)))

    # Flatten weights: bf16 matmul operands, f32 biases; zero-pad final layer lanes.
    n_layers = len(params)
    flat = []
    for li, (w, b) in enumerate(params):
        if li == n_layers - 1 and w.shape[1] != Np:
            w = jnp.pad(w, ((0, 0), (0, Np - w.shape[1])))
            b = jnp.pad(b, ((0, 0), (0, Np - b.shape[1])))
        flat.append(w.astype(jnp.bfloat16))
        flat.append(b.astype(jnp.float32))

    in_specs = [pl.BlockSpec((tb, D), lambda i: (i, 0))]
    for arr in flat:
        # Grid-invariant blocks: fetched once, stay resident across grid steps.
        in_specs.append(pl.BlockSpec(arr.shape, lambda i: (0, 0)))

    grid = (num_tiles,)

    flops = 2 * Bp * (D * HIDDEN + HIDDEN * HIDDEN * N_HIDDEN_LAYERS + HIDDEN * Np)
    transcendentals = Bp * (HIDDEN * (N_HIDDEN_LAYERS + 1) + Np)  # 1 tanh / activation
    bytes_accessed = (x_p.size * 4
                      + sum(a.size * a.dtype.itemsize for a in flat)
                      + Bp * Np * 2)

    out = pl.pallas_call(
        functools.partial(mlp_kernel, act_dtype=ACT_DTYPE),
        out_shape=jax.ShapeDtypeStruct((Bp, Np), jnp.bfloat16),
        grid_spec=pltpu.PrefetchScalarGridSpec(
            num_scalar_prefetch=0,
            grid=grid,
            in_specs=in_specs,
            out_specs=pl.BlockSpec((tb, Np), lambda i: (i, 0)),
        ),
        compiler_params=pltpu.CompilerParams(
            dimension_semantics=("parallel",),
            vmem_limit_bytes=48 * 1024 * 1024,   # safe on v7x's 64 MiB physical VMEM
        ),
        cost_estimate=pl.CostEstimate(
            flops=flops,
            transcendentals=transcendentals,
            bytes_accessed=bytes_accessed,
        ),
    )(x_p, *flat)

    return out[:B, :out_features].astype(jnp.float32)


def init_params(key, in_dim, out_dim):
    """Deterministic Linear-layer-style init for the FCBlock stack."""
    dims = [in_dim] + [HIDDEN] * (N_HIDDEN_LAYERS + 1) + [out_dim]
    params = []
    for li in range(len(dims) - 1):
        fan_in, fan_out = dims[li], dims[li + 1]
        key, kw, kb = jax.random.split(key, 3)
        bound = 1.0 / jnp.sqrt(fan_in)
        w = jax.random.uniform(kw, (fan_in, fan_out), jnp.float32, -bound, bound)
        b = jax.random.uniform(kb, (1, fan_out), jnp.float32, -bound, bound)
        params.append((w, b))
    return params


def reference_forward(x, params):
    """Pure-JAX f32 reference (matches torch Linear + Sigmoid stack)."""
    h = x
    for (w, b) in params:
        h = 1.0 / (1.0 + jnp.exp(-(h @ w + b)))
    return h


if __name__ == "__main__":
    key = jax.random.PRNGKey(0)
    key, kx1, kx2 = jax.random.split(key, 3)

    # return_type='boolean' -> out_features=1 (lane-padded to 128 in-kernel).
    # B=4: not a multiple of 8 -> exercises the batch-padding path.
    x_bool = jax.random.normal(kx1, (4, LATENT_DIM), jnp.float32)
    params_bool = init_params(jax.random.PRNGKey(42), LATENT_DIM, 1)
    out_bool = jax.block_until_ready(
        neuro_predicate_forward(x_bool, params_bool, out_features=1))
    ref_bool = reference_forward(x_bool, params_bool)
    assert out_bool.shape == (4, 1)
    assert jnp.max(jnp.abs(out_bool - ref_bool)) < 5e-2, \
        "boolean head mismatch vs. f32 reference (bf16 end-to-end tolerance)"

    # return_type='vector' -> out_features=latent_dim.
    # B=20 (>=16) -> balanced 2-tile grid path (v7x megacore sharding).
    x_vec = jax.random.normal(kx2, (20, LATENT_DIM), jnp.float32)
    params_vec = init_params(jax.random.PRNGKey(7), LATENT_DIM, LATENT_DIM)
    out_vec = jax.block_until_ready(
        neuro_predicate_forward(x_vec, params_vec, out_features=LATENT_DIM))
    ref_vec = reference_forward(x_vec, params_vec)
    assert out_vec.shape == (20, LATENT_DIM)
    assert jnp.max(jnp.abs(out_vec - ref_vec)) < 5e-2, \
        "vector head mismatch vs. f32 reference (bf16 end-to-end tolerance)"

    print("KERNEL_OK")
</pallas_src>

<mosaic_0001>
module attributes {stable_mosaic.version = 11 : i64} {
  func.func @mlp_kernel(%arg0: i32, %arg1: memref<8x128xf32, #tpu.memory_space<vmem>>, %arg2: memref<128x128xbf16, #tpu.memory_space<vmem>>, %arg3: memref<1x128xf32, #tpu.memory_space<vmem>>, %arg4: memref<128x128xbf16, #tpu.memory_space<vmem>>, %arg5: memref<1x128xf32, #tpu.memory_space<vmem>>, %arg6: memref<128x128xbf16, #tpu.memory_space<vmem>>, %arg7: memref<1x128xf32, #tpu.memory_space<vmem>>, %arg8: memref<128x128xbf16, #tpu.memory_space<vmem>>, %arg9: memref<1x128xf32, #tpu.memory_space<vmem>>, %arg10: memref<128x128xbf16, #tpu.memory_space<vmem>>, %arg11: memref<1x128xf32, #tpu.memory_space<vmem>>, %arg12: memref<8x128xbf16, #tpu.memory_space<vmem>>) attributes {dimension_semantics = [#tpu.dimension_semantics<parallel>], iteration_bounds = array<i64: 1>, scalar_prefetch = 0 : i64, scratch_operands = 0 : i64, tpu.core_type = #tpu.core_type<tc>, window_params = [{transform_indices = @transform_0, window_bounds = array<i64: 8, 128>}, {pipeline_mode = #tpu.pipeline_mode<synchronous>, transform_indices = @transform_1, window_bounds = array<i64: 128, 128>}, {pipeline_mode = #tpu.pipeline_mode<synchronous>, transform_indices = @transform_2, window_bounds = array<i64: 1, 128>}, {pipeline_mode = #tpu.pipeline_mode<synchronous>, transform_indices = @transform_3, window_bounds = array<i64: 128, 128>}, {pipeline_mode = #tpu.pipeline_mode<synchronous>, transform_indices = @transform_4, window_bounds = array<i64: 1, 128>}, {pipeline_mode = #tpu.pipeline_mode<synchronous>, transform_indices = @transform_5, window_bounds = array<i64: 128, 128>}, {pipeline_mode = #tpu.pipeline_mode<synchronous>, transform_indices = @transform_6, window_bounds = array<i64: 1, 128>}, {pipeline_mode = #tpu.pipeline_mode<synchronous>, transform_indices = @transform_7, window_bounds = array<i64: 128, 128>}, {pipeline_mode = #tpu.pipeline_mode<synchronous>, transform_indices = @transform_8, window_bounds = array<i64: 1, 128>}, {pipeline_mode = #tpu.pipeline_mode<synchronous>, transform_indices = @transform_9, window_bounds = array<i64: 128, 128>}, {pipeline_mode = #tpu.pipeline_mode<synchronous>, transform_indices = @transform_10, window_bounds = array<i64: 1, 128>}, {transform_indices = @transform_11, window_bounds = array<i64: 8, 128>}]} {
    %c0 = arith.constant 0 : index
    %c0_0 = arith.constant 0 : index
    %0 = vector.load %arg1[%c0, %c0_0] : memref<8x128xf32, #tpu.memory_space<vmem>>, vector<8x128xf32>
    %1 = arith.truncf %0 : vector<8x128xf32> to vector<8x128xbf16>
    %c0_1 = arith.constant 0 : index
    %c0_2 = arith.constant 0 : index
    %2 = vector.load %arg2[%c0_1, %c0_2] : memref<128x128xbf16, #tpu.memory_space<vmem>>, vector<128x128xbf16>
    %cst = arith.constant dense<0.000000e+00> : vector<8x128xf32>
    %3 = tpu.matmul %1, %2, %cst {dimension_numbers = #tpu.dot_dimension_numbers<[1], [0], [0], [1], [0, 0, 1, 1], [], []>} : vector<8x128xbf16>, vector<128x128xbf16>, vector<8x128xf32> -> vector<8x128xf32>
    %c0_3 = arith.constant 0 : index
    %c0_4 = arith.constant 0 : index
    %4 = vector.load %arg3[%c0_3, %c0_4] : memref<1x128xf32, #tpu.memory_space<vmem>>, vector<1x128xf32>
    %5 = vector.broadcast %4 : vector<1x128xf32> to vector<8x128xf32>
    %6 = arith.addf %3, %5 : vector<8x128xf32>
    %7 = arith.truncf %6 : vector<8x128xf32> to vector<8x128xbf16>
    %cst_5 = arith.constant 5.000000e-01 : bf16
    %8 = vector.broadcast %cst_5 : bf16 to vector<8x128xbf16>
    %9 = arith.mulf %7, %8 : vector<8x128xbf16>
    %10 = math.tanh %9 : vector<8x128xbf16>
    %cst_6 = arith.constant 5.000000e-01 : bf16
    %11 = vector.broadcast %cst_6 : bf16 to vector<8x128xbf16>
    %12 = arith.mulf %10, %11 : vector<8x128xbf16>
    %cst_7 = arith.constant 5.000000e-01 : bf16
    %13 = vector.broadcast %cst_7 : bf16 to vector<8x128xbf16>
    %14 = arith.addf %12, %13 : vector<8x128xbf16>
    %c0_8 = arith.constant 0 : index
    %c0_9 = arith.constant 0 : index
    %15 = vector.load %arg4[%c0_8, %c0_9] : memref<128x128xbf16, #tpu.memory_space<vmem>>, vector<128x128xbf16>
    %cst_10 = arith.constant dense<0.000000e+00> : vector<8x128xf32>
    %16 = tpu.matmul %14, %15, %cst_10 {dimension_numbers = #tpu.dot_dimension_numbers<[1], [0], [0], [1], [0, 0, 1, 1], [], []>} : vector<8x128xbf16>, vector<128x128xbf16>, vector<8x128xf32> -> vector<8x128xf32>
    %c0_11 = arith.constant 0 : index
    %c0_12 = arith.constant 0 : index
    %17 = vector.load %arg5[%c0_11, %c0_12] : memref<1x128xf32, #tpu.memory_space<vmem>>, vector<1x128xf32>
    %18 = vector.broadcast %17 : vector<1x128xf32> to vector<8x128xf32>
    %19 = arith.addf %16, %18 : vector<8x128xf32>
    %20 = arith.truncf %19 : vector<8x128xf32> to vector<8x128xbf16>
    %cst_13 = arith.constant 5.000000e-01 : bf16
    %21 = vector.broadcast %cst_13 : bf16 to vector<8x128xbf16>
    %22 = arith.mulf %20, %21 : vector<8x128xbf16>
    %23 = math.tanh %22 : vector<8x128xbf16>
    %cst_14 = arith.constant 5.000000e-01 : bf16
    %24 = vector.broadcast %cst_14 : bf16 to vector<8x128xbf16>
    %25 = arith.mulf %23, %24 : vector<8x128xbf16>
    %cst_15 = arith.constant 5.000000e-01 : bf16
    %26 = vector.broadcast %cst_15 : bf16 to vector<8x128xbf16>
    %27 = arith.addf %25, %26 : vector<8x128xbf16>
    %c0_16 = arith.constant 0 : index
    %c0_17 = arith.constant 0 : index
    %28 = vector.load %arg6[%c0_16, %c0_17] : memref<128x128xbf16, #tpu.memory_space<vmem>>, vector<128x128xbf16>
    %cst_18 = arith.constant dense<0.000000e+00> : vector<8x128xf32>
    %29 = tpu.matmul %27, %28, %cst_18 {dimension_numbers = #tpu.dot_dimension_numbers<[1], [0], [0], [1], [0, 0, 1, 1], [], []>} : vector<8x128xbf16>, vector<128x128xbf16>, vector<8x128xf32> -> vector<8x128xf32>
    %c0_19 = arith.constant 0 : index
    %c0_20 = arith.constant 0 : index
    %30 = vector.load %arg7[%c0_19, %c0_20] : memref<1x128xf32, #tpu.memory_space<vmem>>, vector<1x128xf32>
    %31 = vector.broadcast %30 : vector<1x128xf32> to vector<8x128xf32>
    %32 = arith.addf %29, %31 : vector<8x128xf32>
    %33 = arith.truncf %32 : vector<8x128xf32> to vector<8x128xbf16>
    %cst_21 = arith.constant 5.000000e-01 : bf16
    %34 = vector.broadcast %cst_21 : bf16 to vector<8x128xbf16>
    %35 = arith.mulf %33, %34 : vector<8x128xbf16>
    %36 = math.tanh %35 : vector<8x128xbf16>
    %cst_22 = arith.constant 5.000000e-01 : bf16
    %37 = vector.broadcast %cst_22 : bf16 to vector<8x128xbf16>
    %38 = arith.mulf %36, %37 : vector<8x128xbf16>
    %cst_23 = arith.constant 5.000000e-01 : bf16
    %39 = vector.broadcast %cst_23 : bf16 to vector<8x128xbf16>
    %40 = arith.addf %38, %39 : vector<8x128xbf16>
    %c0_24 = arith.constant 0 : index
    %c0_25 = arith.constant 0 : index
    %41 = vector.load %arg8[%c0_24, %c0_25] : memref<128x128xbf16, #tpu.memory_space<vmem>>, vector<128x128xbf16>
    %cst_26 = arith.constant dense<0.000000e+00> : vector<8x128xf32>
    %42 = tpu.matmul %40, %41, %cst_26 {dimension_numbers = #tpu.dot_dimension_numbers<[1], [0], [0], [1], [0, 0, 1, 1], [], []>} : vector<8x128xbf16>, vector<128x128xbf16>, vector<8x128xf32> -> vector<8x128xf32>
    %c0_27 = arith.constant 0 : index
    %c0_28 = arith.constant 0 : index
    %43 = vector.load %arg9[%c0_27, %c0_28] : memref<1x128xf32, #tpu.memory_space<vmem>>, vector<1x128xf32>
    %44 = vector.broadcast %43 : vector<1x128xf32> to vector<8x128xf32>
    %45 = arith.addf %42, %44 : vector<8x128xf32>
    %46 = arith.truncf %45 : vector<8x128xf32> to vector<8x128xbf16>
    %cst_29 = arith.constant 5.000000e-01 : bf16
    %47 = vector.broadcast %cst_29 : bf16 to vector<8x128xbf16>
    %48 = arith.mulf %46, %47 : vector<8x128xbf16>
    %49 = math.tanh %48 : vector<8x128xbf16>
    %cst_30 = arith.constant 5.000000e-01 : bf16
    %50 = vector.broadcast %cst_30 : bf16 to vector<8x128xbf16>
    %51 = arith.mulf %49, %50 : vector<8x128xbf16>
    %cst_31 = arith.constant 5.000000e-01 : bf16
    %52 = vector.broadcast %cst_31 : bf16 to vector<8x128xbf16>
    %53 = arith.addf %51, %52 : vector<8x128xbf16>
    %c0_32 = arith.constant 0 : index
    %c0_33 = arith.constant 0 : index
    %54 = vector.load %arg10[%c0_32, %c0_33] : memref<128x128xbf16, #tpu.memory_space<vmem>>, vector<128x128xbf16>
    %cst_34 = arith.constant dense<0.000000e+00> : vector<8x128xf32>
    %55 = tpu.matmul %53, %54, %cst_34 {dimension_numbers = #tpu.dot_dimension_numbers<[1], [0], [0], [1], [0, 0, 1, 1], [], []>} : vector<8x128xbf16>, vector<128x128xbf16>, vector<8x128xf32> -> vector<8x128xf32>
    %c0_35 = arith.constant 0 : index
    %c0_36 = arith.constant 0 : index
    %56 = vector.load %arg11[%c0_35, %c0_36] : memref<1x128xf32, #tpu.memory_space<vmem>>, vector<1x128xf32>
    %57 = vector.broadcast %56 : vector<1x128xf32> to vector<8x128xf32>
    %58 = arith.addf %55, %57 : vector<8x128xf32>
    %59 = arith.truncf %58 : vector<8x128xf32> to vector<8x128xbf16>
    %cst_37 = arith.constant 5.000000e-01 : bf16
    %60 = vector.broadcast %cst_37 : bf16 to vector<8x128xbf16>
    %61 = arith.mulf %59, %60 : vector<8x128xbf16>
    %62 = math.tanh %61 : vector<8x128xbf16>
    %cst_38 = arith.constant 5.000000e-01 : bf16
    %63 = vector.broadcast %cst_38 : bf16 to vector<8x128xbf16>
    %64 = arith.mulf %62, %63 : vector<8x128xbf16>
    %cst_39 = arith.constant 5.000000e-01 : bf16
    %65 = vector.broadcast %cst_39 : bf16 to vector<8x128xbf16>
    %66 = arith.addf %64, %65 : vector<8x128xbf16>
    %c0_40 = arith.constant 0 : index
    %c0_41 = arith.constant 0 : index
    %67 = vector.load %arg12[%c0_40, %c0_41] : memref<8x128xbf16, #tpu.memory_space<vmem>>, vector<8x128xbf16>
    tpu.vector_store %arg12[%c0_40, %c0_41], %66 {strides = array<i32>} : memref<8x128xbf16, #tpu.memory_space<vmem>>, vector<8x128xbf16>,
    return
  }
  func.func @transform_0(%arg0: i32) -> (i32, i32) {
    %c0_i32 = arith.constant 0 : i32
    %c0_i32_0 = arith.constant 0 : i32
    return %arg0, %c0_i32 : i32, i32
  }
  func.func @transform_1(%arg0: i32) -> (i32, i32) {
    %c0_i32 = arith.constant 0 : i32
    %c0_i32_0 = arith.constant 0 : i32
    %c0_i32_1 = arith.constant 0 : i32
    return %c0_i32, %c0_i32_0 : i32, i32
  }
  func.func @transform_2(%arg0: i32) -> (i32, i32) {
    %c0_i32 = arith.constant 0 : i32
    %c0_i32_0 = arith.constant 0 : i32
    %c0_i32_1 = arith.constant 0 : i32
    return %c0_i32, %c0_i32_0 : i32, i32
  }
  func.func @transform_3(%arg0: i32) -> (i32, i32) {
    %c0_i32 = arith.constant 0 : i32
    %c0_i32_0 = arith.constant 0 : i32
    %c0_i32_1 = arith.constant 0 : i32
    return %c0_i32, %c0_i32_0 : i32, i32
  }
  func.func @transform_4(%arg0: i32) -> (i32, i32) {
    %c0_i32 = arith.constant 0 : i32
    %c0_i32_0 = arith.constant 0 : i32
    %c0_i32_1 = arith.constant 0 : i32
    return %c0_i32, %c0_i32_0 : i32, i32
  }
  func.func @transform_5(%arg0: i32) -> (i32, i32) {
    %c0_i32 = arith.constant 0 : i32
    %c0_i32_0 = arith.constant 0 : i32
    %c0_i32_1 = arith.constant 0 : i32
    return %c0_i32, %c0_i32_0 : i32, i32
  }
  func.func @transform_6(%arg0: i32) -> (i32, i32) {
    %c0_i32 = arith.constant 0 : i32
    %c0_i32_0 = arith.constant 0 : i32
    %c0_i32_1 = arith.constant 0 : i32
    return %c0_i32, %c0_i32_0 : i32, i32
  }
  func.func @transform_7(%arg0: i32) -> (i32, i32) {
    %c0_i32 = arith.constant 0 : i32
    %c0_i32_0 = arith.constant 0 : i32
    %c0_i32_1 = arith.constant 0 : i32
    return %c0_i32, %c0_i32_0 : i32, i32
  }
  func.func @transform_8(%arg0: i32) -> (i32, i32) {
    %c0_i32 = arith.constant 0 : i32
    %c0_i32_0 = arith.constant 0 : i32
    %c0_i32_1 = arith.constant 0 : i32
    return %c0_i32, %c0_i32_0 : i32, i32
  }
  func.func @transform_9(%arg0: i32) -> (i32, i32) {
    %c0_i32 = arith.constant 0 : i32
    %c0_i32_0 = arith.constant 0 : i32
    %c0_i32_1 = arith.constant 0 : i32
    return %c0_i32, %c0_i32_0 : i32, i32
  }
  func.func @transform_10(%arg0: i32) -> (i32, i32) {
    %c0_i32 = arith.constant 0 : i32
    %c0_i32_0 = arith.constant 0 : i32
    %c0_i32_1 = arith.constant 0 : i32
    return %c0_i32, %c0_i32_0 : i32, i32
  }
  func.func @transform_11(%arg0: i32) -> (i32, i32) {
    %c0_i32 = arith.constant 0 : i32
    %c0_i32_0 = arith.constant 0 : i32
    return %arg0, %c0_i32 : i32, i32
  }
}

</mosaic_0001>

<bundles_post_ra>
// kernel: neuro_predicate_forward.1
= control target key start
LH: loop header
LB: loop body
LE: loop exit
PB: predicated region body
PF: predicated region fallthrough
CT: control target
= control target key end

     0   :  { %s931_s1 = inlined_call_operand.vmem [shape: bf16[128,128], index: 1, kind: input, shape index: {}]   ;;  %s932_s2 = inlined_call_operand.vmem [shape: f32[1,128], index: 2, kind: input, shape index: {}]   ;;  %s933_s0 = inlined_call_operand.vmem [shape: f32[8,128], index: 0, kind: input, shape index: {}]   ;;  %s934_s4 = inlined_call_operand.vmem [shape: f32[1,128], index: 4, kind: input, shape index: {}]   ;;  %s935_s3 = inlined_call_operand.vmem [shape: bf16[128,128], index: 3, kind: input, shape index: {}]   ;;  %s936_s6 = inlined_call_operand.vmem [shape: f32[1,128], index: 6, kind: input, shape index: {}]   ;;  %s937_s5 = inlined_call_operand.vmem [shape: bf16[128,128], index: 5, kind: input, shape index: {}]   ;;  %s938_s8 = inlined_call_operand.vmem [shape: f32[1,128], index: 8, kind: input, shape index: {}]   ;;  %s939_s7 = inlined_call_operand.vmem [shape: bf16[128,128], index: 7, kind: input, shape index: {}]   ;;  %s940_s10 = inlined_call_operand.vmem [shape: f32[1,128], index: 10, kind: input, shape index: {}]   ;;  %s941_s9 = inlined_call_operand.vmem [shape: bf16[128,128], index: 9, kind: input, shape index: {}]   ;;  %s942_s11 = inlined_call_operand.vmem [shape: bf16[8,128], index: 11, kind: output, shape index: {}]  }
   0x1   :  { %v682_v0 = vld [vmem:[%s931_s1 + $0x38] sm:$0xff]  ;;  %v681_v1 = vld [vmem:[%s931_s1 + $0x30] sm:$0xff]  ;;  %v680_v2 = vld [vmem:[%s931_s1 + $0x28] sm:$0xff] }
   0x2   :  { %108 = vmatpush.bf16.msra.mxu0 %v682_v0  ;;  %v679_v3 = vld [vmem:[%s931_s1 + $0x20] sm:$0xff]  ;;  %v678_v4 = vld [vmem:[%s931_s1 + $0x18] sm:$0xff]  ;;  %v677_v5 = vld [vmem:[%s931_s1 + $0x10] sm:$0xff] }
   0x3   :  { %v676_v6 = vld [vmem:[%s931_s1 + $0x8] sm:$0xff]  ;;  %v675_v7 = vld [vmem:[%s931_s1] sm:$0xff]  ;;  %v690_v10 = vld [vmem:[%s935_s3 + $0x38] sm:$0xff] }
   0x4   :  { %v38_v8 = vld [vmem:[%s933_s0] sm:$0xff]  ;;  %202 = vmatpush.bf16.msra.mxu1 %v690_v10  ;;  %v689_v11 = vld [vmem:[%s935_s3 + $0x30] sm:$0xff]  ;;  %v688_v12 = vld [vmem:[%s935_s3 + $0x28] sm:$0xff] }
   0x5   :  { %v39_v9 = vpack.c.bf16 %v38_v8, %v38_v8  ;;  %v687_v13 = vld [vmem:[%s935_s3 + $0x20] sm:$0xff]  ;;  %v686_v14 = vld [vmem:[%s935_s3 + $0x18] sm:$0xff]  ;;  %v685_v15 = vld [vmem:[%s935_s3 + $0x10] sm:$0xff] }
   0x6   :  { %109 = vmatpush.bf16.msra.mxu0 %v681_v1  ;;  %v684_v16 = vld [vmem:[%s935_s3 + $0x8] sm:$0xff]  ;;  %v683_v17 = vld [vmem:[%s935_s3] sm:$0xff]  ;;  %v698_v35 = vld [vmem:[%s937_s5 + $0x38] sm:$0xff] }
   0x7   :  { %v715_v18 = vld [vmem:[%s932_s2] ss:$0 sm:$0xff]  ;;  %296 = vmatpush.bf16.msra.mxu2 %v698_v35  ;;  %v697_v36 = vld [vmem:[%s937_s5 + $0x30] sm:$0xff]  ;;  %v696_v37 = vld [vmem:[%s937_s5 + $0x28] sm:$0xff] }
   0x8   :  { %203 = vmatpush.bf16.msra.mxu1 %v689_v11  ;;  %v695_v38 = vld [vmem:[%s937_s5 + $0x20] sm:$0xff]  ;;  %v694_v39 = vld [vmem:[%s937_s5 + $0x18] sm:$0xff]  ;;  %v693_v40 = vld [vmem:[%s937_s5 + $0x10] sm:$0xff] }
   0x9   :  { %v692_v41 = vld [vmem:[%s937_s5 + $0x8] sm:$0xff]  ;;  %v691_v42 = vld [vmem:[%s937_s5] sm:$0xff]  ;;  %v706_v60 = vld [vmem:[%s939_s7 + $0x38] sm:$0xff] }
   0xa   :  { %110 = vmatpush.bf16.msra.mxu0 %v680_v2  ;;  %v716_v43 = vld [vmem:[%s934_s4] ss:$0 sm:$0xff]  ;;  %390 = vmatpush.bf16.msra.mxu3 %v706_v60  ;;  %v705_v61 = vld [vmem:[%s939_s7 + $0x30] sm:$0xff]  ;;  %v704_v62 = vld [vmem:[%s939_s7 + $0x28] sm:$0xff] }
   0xb   :  { %297 = vmatpush.bf16.msra.mxu2 %v697_v36  ;;  %v703_v63 = vld [vmem:[%s939_s7 + $0x20] sm:$0xff]  ;;  %v702_v0 = vld [vmem:[%s939_s7 + $0x18] sm:$0xff]  ;;  %v701_v1 = vld [vmem:[%s939_s7 + $0x10] sm:$0xff] }
   0xc   :  { %204 = vmatpush.bf16.msra.mxu1 %v688_v12  ;;  %v700_v2 = vld [vmem:[%s939_s7 + $0x8] sm:$0xff] }
   0xe   :  { %111 = vmatpush.bf16.msra.mxu0 %v679_v3  ;;  %391 = vmatpush.bf16.msra.mxu3 %v705_v61  ;;  %v699_v3 = vld [vmem:[%s939_s7] sm:$0xff] }
   0xf   :  { %298 = vmatpush.bf16.msra.mxu2 %v696_v37 }
  0x10   :  { %205 = vmatpush.bf16.msra.mxu1 %v687_v13 }
  0x12   :  { %112 = vmatpush.bf16.msra.mxu0 %v678_v4  ;;  %392 = vmatpush.bf16.msra.mxu3 %v704_v62  ;;  %v717_v4 = vld [vmem:[%s936_s6] ss:$0 sm:$0xff] }
  0x13   :  { %299 = vmatpush.bf16.msra.mxu2 %v695_v38 }
  0x14   :  { %206 = vmatpush.bf16.msra.mxu1 %v686_v14 }
  0x16   :  { %113 = vmatpush.bf16.msra.mxu0 %v677_v5  ;;  %393 = vmatpush.bf16.msra.mxu3 %v703_v63 }
  0x17   :  { %300 = vmatpush.bf16.msra.mxu2 %v694_v39 }
  0x18   :  { %207 = vmatpush.bf16.msra.mxu1 %v685_v15 }
  0x1a   :  { %114 = vmatpush.bf16.msra.mxu0 %v676_v6  ;;  %394 = vmatpush.bf16.msra.mxu3 %v702_v0 }
  0x1b   :  { %301 = vmatpush.bf16.msra.mxu2 %v693_v40 }
  0x1c   :  { %208 = vmatpush.bf16.msra.mxu1 %v684_v16 }
  0x1e   :  { %115 = vmatpush.bf16.msra.mxu0 %v675_v7  ;;  %395 = vmatpush.bf16.msra.mxu3 %v701_v1 }
  0x1f   :  { %302 = vmatpush.bf16.msra.mxu2 %v692_v41 }
  0x20   :  { %209 = vmatpush.bf16.msra.mxu1 %v683_v17 }
  0x21   :  { %116 = vmatmul.bf16.vlgmr.msra.gmra.mxu0 %v39_v9 }
  0x22   :  { %396 = vmatpush.bf16.msra.mxu3 %v700_v2 }
  0x23   :  { %303 = vmatpush.bf16.msra.mxu2 %v691_v42 }
  0x26   :  { %397 = vmatpush.bf16.msra.mxu3 %v699_v3 }
  0x9e   :  { %v117_v19 = vpop.f32.mrf.mxu0 }
  0x9f   :  { %v118_v20 = vadd.f32 %v715_v18, %v117_v19 }
  0xa1   :  { %v121_v21 = vpack.c.bf16 %v118_v20, %v118_v20 }
  0xa3   :  { %v122_v22 = vunpack.c.l.bf16 %v121_v21  ;;  %v714_v21 = vld [vmem:[%s941_s9 + $0x38] sm:$0xff] }
  0xa4   :  { %484 = vmatpush.bf16.msrb.mxu0 %v714_v21 }
  0xa5   :  { %v123_v23 = vmul.f32 0.5, %v122_v22  ;;  %v713_v22 = vld [vmem:[%s941_s9 + $0x30] sm:$0xff] }
  0xa6   :  { %v119_v24 = vpop.f32.mrf.mxu0 }
  0xa7   :  { %v124_v25 = vpack.c.bf16 %v123_v23, %v123_v23  ;;  %v712_v23 = vld [vmem:[%s941_s9 + $0x28] sm:$0xff]  ;;  %v711_v24 = vld [vmem:[%s941_s9 + $0x20] sm:$0xff] }
  0xa8   :  { %485 = vmatpush.bf16.msrb.mxu0 %v713_v22 }
  0xa9   :  { %v125_v26 = vunpack.c.l.bf16 %v124_v25  ;;  %v710_v25 = vld [vmem:[%s941_s9 + $0x18] sm:$0xff] }
  0xab   :  { %720 = vtanh.f32 %v125_v26  ;;  %v709_v26 = vld [vmem:[%s941_s9 + $0x10] sm:$0xff] }
  0xac   :  { %486 = vmatpush.bf16.msrb.mxu0 %v712_v23 }
  0xb0   :  { %487 = vmatpush.bf16.msrb.mxu0 %v711_v24 }
  0xb1   :  { %v721_v27 = vpop.eup %720 }
  0xb2   :  { %v127_v28 = vpack.c.bf16 %v721_v27, %v721_v27  ;;  %v708_v27 = vld [vmem:[%s941_s9 + $0x8] sm:$0xff] }
  0xb4   :  { %v128_v29 = vunpack.c.l.bf16 %v127_v28  ;;  %488 = vmatpush.bf16.msrb.mxu0 %v710_v25  ;;  %v707_v28 = vld [vmem:[%s941_s9] sm:$0xff] }
  0xb6   :  { %v129_v30 = vmul.f32 0.5, %v128_v29  ;;  %v718_v29 = vld [vmem:[%s938_s8] ss:$0 sm:$0xff] }
  0xb8   :  { %v130_v31 = vpack.c.bf16 %v129_v30, %v129_v30  ;;  %489 = vmatpush.bf16.msrb.mxu0 %v709_v26 }
  0xba   :  { %v131_v32 = vunpack.c.l.bf16 %v130_v31 }
  0xbc   :  { %v132_v33 = vadd.f32 0.5, %v131_v32  ;;  %490 = vmatpush.bf16.msrb.mxu0 %v708_v27 }
  0xbe   :  { %v133_v34 = vpack.c.bf16 %v132_v33, %v132_v33 }
  0xc0   :  { %210 = vmatmul.bf16.vlgmr.msra.gmra.mxu1 %v133_v34  ;;  %491 = vmatpush.bf16.msrb.mxu0 %v707_v28 }
 0x13d   :  { %v211_v44 = vpop.f32.mrf.mxu1 }
 0x13e   :  { %v212_v45 = vadd.f32 %v716_v43, %v211_v44 }
 0x140   :  { %v215_v46 = vpack.c.bf16 %v212_v45, %v212_v45 }
 0x142   :  { %v216_v47 = vunpack.c.l.bf16 %v215_v46  ;;  %v719_v46 = vld [vmem:[%s940_s10] ss:$0 sm:$0xff] }
 0x144   :  { %v217_v48 = vmul.f32 0.5, %v216_v47 }
 0x145   :  { %v213_v49 = vpop.f32.mrf.mxu1 }
 0x146   :  { %v218_v50 = vpack.c.bf16 %v217_v48, %v217_v48 }
 0x148   :  { %v219_v51 = vunpack.c.l.bf16 %v218_v50 }
 0x14a   :  { %722 = vtanh.f32 %v219_v51 }
 0x150   :  { %v723_v52 = vpop.eup %722 }
 0x151   :  { %v221_v53 = vpack.c.bf16 %v723_v52, %v723_v52 }
 0x153   :  { %v222_v54 = vunpack.c.l.bf16 %v221_v53 }
 0x155   :  { %v223_v55 = vmul.f32 0.5, %v222_v54 }
 0x157   :  { %v224_v56 = vpack.c.bf16 %v223_v55, %v223_v55 }
 0x159   :  { %v225_v57 = vunpack.c.l.bf16 %v224_v56 }
 0x15b   :  { %v226_v58 = vadd.f32 0.5, %v225_v57 }
 0x15d   :  { %v227_v59 = vpack.c.bf16 %v226_v58, %v226_v58 }
 0x15f   :  { %304 = vmatmul.bf16.vlgmr.msra.gmra.mxu2 %v227_v59 }
 0x1e2   :  { %v305_v5 = vpop.f32.mrf.mxu2 }
 0x1e3   :  { %v306_v6 = vadd.f32 %v717_v4, %v305_v5 }
 0x1e5   :  { %v309_v7 = vpack.c.bf16 %v306_v6, %v306_v6 }
 0x1e7   :  { %v310_v8 = vunpack.c.l.bf16 %v309_v7 }
 0x1e9   :  { %v311_v9 = vmul.f32 0.5, %v310_v8 }
 0x1ea   :  { %v307_v10 = vpop.f32.mrf.mxu2 }
 0x1eb   :  { %v312_v11 = vpack.c.bf16 %v311_v9, %v311_v9 }
 0x1ed   :  { %v313_v12 = vunpack.c.l.bf16 %v312_v11 }
 0x1ef   :  { %724 = vtanh.f32 %v313_v12 }
 0x1f5   :  { %v725_v13 = vpop.eup %724 }
 0x1f6   :  { %v315_v14 = vpack.c.bf16 %v725_v13, %v725_v13 }
 0x1f8   :  { %v316_v15 = vunpack.c.l.bf16 %v315_v14 }
 0x1fa   :  { %v317_v16 = vmul.f32 0.5, %v316_v15 }
 0x1fc   :  { %v318_v17 = vpack.c.bf16 %v317_v16, %v317_v16 }
 0x1fe   :  { %v319_v18 = vunpack.c.l.bf16 %v318_v17 }
 0x200   :  { %v320_v19 = vadd.f32 0.5, %v319_v18 }
 0x202   :  { %v321_v20 = vpack.c.bf16 %v320_v19, %v320_v19 }
 0x204   :  { %398 = vmatmul.bf16.vlgmr.msra.gmra.mxu3 %v321_v20 }
 0x287   :  { %v399_v30 = vpop.f32.mrf.mxu3 }
 0x288   :  { %v400_v31 = vadd.f32 %v718_v29, %v399_v30 }
 0x28a   :  { %v403_v32 = vpack.c.bf16 %v400_v31, %v400_v31 }
 0x28c   :  { %v404_v33 = vunpack.c.l.bf16 %v403_v32 }
 0x28e   :  { %v405_v34 = vmul.f32 0.5, %v404_v33 }
 0x28f   :  { %v401_v35 = vpop.f32.mrf.mxu3 }
 0x290   :  { %v406_v36 = vpack.c.bf16 %v405_v34, %v405_v34 }
 0x292   :  { %v407_v37 = vunpack.c.l.bf16 %v406_v36 }
 0x294   :  { %726 = vtanh.f32 %v407_v37 }
 0x29a   :  { %v727_v38 = vpop.eup %726 }
 0x29b   :  { %v409_v39 = vpack.c.bf16 %v727_v38, %v727_v38 }
 0x29d   :  { %v410_v40 = vunpack.c.l.bf16 %v409_v39 }
 0x29f   :  { %v411_v41 = vmul.f32 0.5, %v410_v40 }
 0x2a1   :  { %v412_v42 = vpack.c.bf16 %v411_v41, %v411_v41 }
 0x2a3   :  { %v413_v43 = vunpack.c.l.bf16 %v412_v42 }
 0x2a5   :  { %v414_v44 = vadd.f32 0.5, %v413_v43 }
 0x2a7   :  { %v415_v45 = vpack.c.bf16 %v414_v44, %v414_v44 }
 0x2a9   :  { %492 = vmatmul.bf16.vlgmr.msrb.gmra.mxu0 %v415_v45 }
 0x326   :  { %v493_v47 = vpop.f32.mrf.mxu0 }
 0x327   :  { %v494_v48 = vadd.f32 %v719_v46, %v493_v47 }
 0x329   :  { %v497_v49 = vpack.c.bf16 %v494_v48, %v494_v48 }
 0x32b   :  { %v498_v50 = vunpack.c.l.bf16 %v497_v49 }
 0x32d   :  { %v499_v51 = vmul.f32 0.5, %v498_v50 }
 0x32e   :  { %v495_v52 = vpop.f32.mrf.mxu0 }
 0x32f   :  { %v500_v53 = vpack.c.bf16 %v499_v51, %v499_v51 }
 0x331   :  { %v501_v54 = vunpack.c.l.bf16 %v500_v53 }
 0x333   :  { %728 = vtanh.f32 %v501_v54 }
 0x339   :  { %v729_v55 = vpop.eup %728 }
 0x33a   :  { %v503_v56 = vpack.c.bf16 %v729_v55, %v729_v55 }
 0x33c   :  { %v504_v57 = vunpack.c.l.bf16 %v503_v56 }
 0x33e   :  { %v505_v58 = vmul.f32 0.5, %v504_v57 }
 0x340   :  { %v506_v59 = vpack.c.bf16 %v505_v58, %v505_v58 }
 0x342   :  { %v507_v60 = vunpack.c.l.bf16 %v506_v59 }
 0x344   :  { %v508_v61 = vadd.f32 0.5, %v507_v60 }
 0x346   :  { %v509_v62 = vpack.c.bf16 %v508_v61, %v508_v61 }
 0x348   :  { %510 = vst [vmem:[%s942_s11] sm:$0xf] %v509_v62 }

</bundles_post_ra>
